<compile_context>
chip_gen: v7x
topology: tpu7x:2x2x1
jax: 0.10.0
libtpu: 0.0.40
codegen_flags: <defaults>
</compile_context>

<pallas_src>
import jax
import jax.numpy as jnp
from jax.experimental import pallas as pl
from jax.experimental.pallas import tpu as pltpu

B, C, H, W = 2, 4, 16, 16
CHW = C * H * W            # 1024
D = 32                     # true feature / hidden dim of the module
DP = 128                   # lane-padded feature dim (full vreg lane width)
MB = 16                    # row-block size (multiple of 16 for bf16 sublanes)
NUM_CAMS = 4
NUM_VIEWS = 4


def _make_models_kernel(x_ref, emb_ref, w1_ref, ws_ref, bs_ref, out_ref):
    f32 = jnp.float32
    bf16 = jnp.bfloat16
    b1 = bs_ref[0:1, :]                      # (1, DP), zero beyond D
    b2 = bs_ref[1:2, :]
    bc = bs_ref[2:3, :]
    br = bs_ref[3:4, :]

    # --- self.model(x, cam_label, view_label) -> (feat, feat_ori) ---
    # First dot at true N=32 (unpadded w1), bf16 operands, f32 accumulation.
    fb = jnp.dot(x_ref[...], w1_ref[...], preferred_element_type=f32)   # (MB, D)
    # Lane-pad once in-register to DP for the DP-wide downstream dots.
    fb = jnp.concatenate(
        [fb, jnp.zeros((fb.shape[0], DP - D), f32)], axis=1)            # (MB, DP)
    feat_base = fb + b1                                                  # (MB, DP)
    feat = feat_base + emb_ref[...]                                      # (MB, DP)
    feat_ori = jnp.dot(jnp.maximum(feat_base, 0.0).astype(bf16), ws_ref[0],
                       preferred_element_type=f32) + b2                  # (MB, DP)

    # --- self.feat_sep(feat_ori) ---
    # Only the clear branch feeds rec_feat; corrupt branch + classifier heads
    # are dead code w.r.t. the module's return value.
    img_clear = jnp.maximum(
        jnp.dot(feat_ori.astype(bf16), ws_ref[1],
                preferred_element_type=f32) + bc, 0.0)                   # (MB, DP)

    # --- self.decoder(img_clear, feat) -> rec_feat ---
    # Two accumulated dots replace the concat-in-scratch round trip.
    rec = (jnp.dot(img_clear.astype(bf16), ws_ref[2], preferred_element_type=f32)
           + jnp.dot(feat.astype(bf16), ws_ref[3], preferred_element_type=f32)
           + br)
    # TODO(synk): rec_clean_image head omitted (unused by make_models.forward).
    out_ref[...] = jnp.maximum(rec, 0.0)


def init_params(key):
    """Parameters in their natural (unpadded) module shapes."""
    ks = jax.random.split(key, 8)

    def w(k, shape, scale):
        return jax.random.normal(k, shape, jnp.float32) * scale

    zeros = lambda: jnp.zeros((D,), jnp.float32)
    return dict(
        w1=w(ks[0], (CHW, D), 0.02), b1=zeros(),
        w2=w(ks[1], (D, D), 0.1),    b2=zeros(),
        wc=w(ks[2], (D, D), 0.1),    bc=zeros(),
        wr1=w(ks[3], (D, D), 0.1),
        wr2=w(ks[4], (D, D), 0.1),
        br=zeros(),
        cam_emb=w(ks[5], (NUM_CAMS, D), 0.1),
        view_emb=w(ks[6], (NUM_VIEWS, D), 0.1),
        # NOTE: classifier / corrupt-branch weights intentionally not allocated:
        # their outputs are discarded by make_models.forward.
    )


def pack_params(params):
    """One-time wrapper-side packing / lane-padding / dtype casts."""
    def pad_sq(a):             # (D, D) -> (DP, DP)
        return jnp.pad(a, ((0, DP - a.shape[0]), (0, DP - a.shape[1])))

    def pad_b(b):              # (D,) -> (DP,)
        return jnp.pad(b, (0, DP - b.shape[0]))

    def pad_cols(a):           # (n, D) -> (n, DP)
        return jnp.pad(a, ((0, 0), (0, DP - a.shape[1])))

    w1 = params["w1"].astype(jnp.bfloat16)                              # (CHW, D) unpadded N
    ws = jnp.stack([pad_sq(params["w2"]), pad_sq(params["wc"]),
                    pad_sq(params["wr1"]), pad_sq(params["wr2"])]
                   ).astype(jnp.bfloat16)                               # (4, DP, DP)
    bs = jnp.stack([pad_b(params["b1"]), pad_b(params["b2"]),
                    pad_b(params["bc"]), pad_b(params["br"])])          # (4, DP) f32
    cam = pad_cols(params["cam_emb"])                                   # (NUM_CAMS, DP)
    view = pad_cols(params["view_emb"])                                 # (NUM_VIEWS, DP)
    return dict(w1=w1, ws=ws, bs=bs, cam=cam, view=view)


def make_models_forward(packed, x, camids, target_view):
    """Returns rec_feat, shape (batch, D) float32."""
    b = x.shape[0]
    x_flat = x.reshape(b, CHW).astype(jnp.bfloat16)
    # Embedding gathers are data-dependent row lookups -> plain JAX glue.
    emb = (packed["cam"][camids] + packed["view"][target_view]).astype(jnp.float32)

    # Pad rows to a multiple of the row-block so the grid tiles cleanly.
    b_pad = ((b + MB - 1) // MB) * MB
    x_flat = jnp.pad(x_flat, ((0, b_pad - b), (0, 0)))
    emb = jnp.pad(emb, ((0, b_pad - b), (0, 0)))
    grid = (b_pad // MB,)

    flops = (2 * b_pad * CHW * D          # backbone projection (N=32)
             + 4 * (2 * b_pad * DP * DP)) # w2 + wc + wr1 + wr2
    bytes_accessed = (x_flat.size * 2 + emb.size * 4
                      + packed["w1"].size * 2 + packed["ws"].size * 2
                      + packed["bs"].size * 4 + b_pad * DP * 4)

    out = pl.pallas_call(
        _make_models_kernel,
        out_shape=jax.ShapeDtypeStruct((b_pad, DP), jnp.float32),
        grid_spec=pltpu.PrefetchScalarGridSpec(
            num_scalar_prefetch=0,
            grid=grid,
            in_specs=[
                pl.BlockSpec((MB, CHW), lambda i: (i, 0)),       # x rows
                pl.BlockSpec((MB, DP), lambda i: (i, 0)),        # emb rows
                pl.BlockSpec((CHW, D), lambda i: (0, 0)),        # w1 (resident)
                pl.BlockSpec((4, DP, DP), lambda i: (0, 0, 0)),  # stacked weights
                pl.BlockSpec((4, DP), lambda i: (0, 0)),         # stacked biases
            ],
            out_specs=pl.BlockSpec((MB, DP), lambda i: (i, 0)),
        ),
        compiler_params=pltpu.CompilerParams(
            dimension_semantics=("parallel",)),
        cost_estimate=pl.CostEstimate(flops=flops, transcendentals=0,
                                      bytes_accessed=bytes_accessed),
    )(x_flat, emb, packed["w1"], packed["ws"], packed["bs"])
    return out[:b, :D]


def reference_forward(params, x, camids, target_view):
    """Pure-JAX reference with the same numerics (bf16 operands, f32 acc)."""
    f32, bf16 = jnp.float32, jnp.bfloat16
    x_flat = x.reshape(x.shape[0], CHW)
    fb = jnp.dot(x_flat.astype(bf16), params["w1"].astype(bf16),
                 preferred_element_type=f32) + params["b1"]
    feat = fb + params["cam_emb"][camids] + params["view_emb"][target_view]
    feat_ori = jnp.dot(jax.nn.relu(fb).astype(bf16), params["w2"].astype(bf16),
                       preferred_element_type=f32) + params["b2"]
    img_clear = jax.nn.relu(
        jnp.dot(feat_ori.astype(bf16), params["wc"].astype(bf16),
                preferred_element_type=f32) + params["bc"])
    rec_feat = jax.nn.relu(
        jnp.dot(img_clear.astype(bf16), params["wr1"].astype(bf16),
                preferred_element_type=f32)
        + jnp.dot(feat.astype(bf16), params["wr2"].astype(bf16),
                  preferred_element_type=f32)
        + params["br"])
    return rec_feat


if __name__ == "__main__":
    key = jax.random.PRNGKey(0)
    k_param, k_x = jax.random.split(key)
    params = init_params(k_param)
    packed = pack_params(params)

    x = jax.random.normal(k_x, (B, C, H, W), jnp.float32)   # NCHW like PyTorch
    camids = jnp.array([0, 1], dtype=jnp.int32)
    target_view = jnp.array([1, 2], dtype=jnp.int32)

    rec_feat = make_models_forward(packed, x, camids, target_view)
    rec_feat = jax.block_until_ready(rec_feat)
    assert rec_feat.shape == (B, D) and rec_feat.dtype == jnp.float32

    ref = jax.block_until_ready(reference_forward(params, x, camids, target_view))
    assert bool(jnp.allclose(rec_feat, ref, rtol=2e-2, atol=2e-2)), "mismatch vs reference"

    print("KERNEL_OK")
</pallas_src>

<mosaic_0001>
module attributes {stable_mosaic.version = 11 : i64} {
  func.func @_make_models_kernel(%arg0: i32, %arg1: memref<16x1024xbf16, #tpu.memory_space<vmem>>, %arg2: memref<16x128xf32, #tpu.memory_space<vmem>>, %arg3: memref<1024x32xbf16, #tpu.memory_space<vmem>>, %arg4: memref<4x128x128xbf16, #tpu.memory_space<vmem>>, %arg5: memref<4x128xf32, #tpu.memory_space<vmem>>, %arg6: memref<16x128xf32, #tpu.memory_space<vmem>>) attributes {dimension_semantics = [#tpu.dimension_semantics<parallel>], iteration_bounds = array<i64: 1>, scalar_prefetch = 0 : i64, scratch_operands = 0 : i64, tpu.core_type = #tpu.core_type<tc>, window_params = [{transform_indices = @transform_0, window_bounds = array<i64: 16, 1024>}, {transform_indices = @transform_1, window_bounds = array<i64: 16, 128>}, {pipeline_mode = #tpu.pipeline_mode<synchronous>, transform_indices = @transform_2, window_bounds = array<i64: 1024, 32>}, {pipeline_mode = #tpu.pipeline_mode<synchronous>, transform_indices = @transform_3, window_bounds = array<i64: 4, 128, 128>}, {pipeline_mode = #tpu.pipeline_mode<synchronous>, transform_indices = @transform_4, window_bounds = array<i64: 4, 128>}, {transform_indices = @transform_5, window_bounds = array<i64: 16, 128>}]} {
    %c0 = arith.constant 0 : index
    %c0_0 = arith.constant 0 : index
    %0 = vector.load %arg5[%c0, %c0_0] : memref<4x128xf32, #tpu.memory_space<vmem>>, vector<1x128xf32>
    %c1 = arith.constant 1 : index
    %c0_1 = arith.constant 0 : index
    %1 = vector.load %arg5[%c1, %c0_1] : memref<4x128xf32, #tpu.memory_space<vmem>>, vector<1x128xf32>
    %c2 = arith.constant 2 : index
    %c0_2 = arith.constant 0 : index
    %2 = vector.load %arg5[%c2, %c0_2] : memref<4x128xf32, #tpu.memory_space<vmem>>, vector<1x128xf32>
    %c3 = arith.constant 3 : index
    %c0_3 = arith.constant 0 : index
    %3 = vector.load %arg5[%c3, %c0_3] : memref<4x128xf32, #tpu.memory_space<vmem>>, vector<1x128xf32>
    %c0_4 = arith.constant 0 : index
    %c0_5 = arith.constant 0 : index
    %4 = vector.load %arg1[%c0_4, %c0_5] : memref<16x1024xbf16, #tpu.memory_space<vmem>>, vector<16x1024xbf16>
    %c0_6 = arith.constant 0 : index
    %c0_7 = arith.constant 0 : index
    %5 = vector.load %arg3[%c0_6, %c0_7] : memref<1024x32xbf16, #tpu.memory_space<vmem>>, vector<1024x32xbf16>
    %cst = arith.constant dense<0.000000e+00> : vector<16x32xf32>
    %6 = tpu.matmul %4, %5, %cst {dimension_numbers = #tpu.dot_dimension_numbers<[1], [0], [0], [1], [0, 0, 1, 1], [], []>} : vector<16x1024xbf16>, vector<1024x32xbf16>, vector<16x32xf32> -> vector<16x32xf32>
    %cst_8 = arith.constant 0.000000e+00 : f32
    %7 = vector.broadcast %cst_8 : f32 to vector<16x96xf32>
    %8 = tpu.concatenate %6, %7 in 1 : vector<16x32xf32>, vector<16x96xf32> -> vector<16x128xf32>
    %9 = vector.broadcast %0 : vector<1x128xf32> to vector<16x128xf32>
    %10 = arith.addf %8, %9 : vector<16x128xf32>
    %c0_9 = arith.constant 0 : index
    %c0_10 = arith.constant 0 : index
    %11 = vector.load %arg2[%c0_9, %c0_10] : memref<16x128xf32, #tpu.memory_space<vmem>>, vector<16x128xf32>
    %12 = arith.addf %10, %11 : vector<16x128xf32>
    %cst_11 = arith.constant 0.000000e+00 : f32
    %13 = vector.broadcast %cst_11 : f32 to vector<16x128xf32>
    %14 = arith.maximumf %10, %13 : vector<16x128xf32>
    %15 = arith.truncf %14 : vector<16x128xf32> to vector<16x128xbf16>
    %c0_12 = arith.constant 0 : index
    %c0_13 = arith.constant 0 : index
    %c0_14 = arith.constant 0 : index
    %16 = vector.load %arg4[%c0_12, %c0_13, %c0_14] : memref<4x128x128xbf16, #tpu.memory_space<vmem>>, vector<1x128x128xbf16>
    %17 = vector.shape_cast %16 : vector<1x128x128xbf16> to vector<128x128xbf16>
    %cst_15 = arith.constant dense<0.000000e+00> : vector<16x128xf32>
    %18 = tpu.matmul %15, %17, %cst_15 {dimension_numbers = #tpu.dot_dimension_numbers<[1], [0], [0], [1], [0, 0, 1, 1], [], []>} : vector<16x128xbf16>, vector<128x128xbf16>, vector<16x128xf32> -> vector<16x128xf32>
    %19 = vector.broadcast %1 : vector<1x128xf32> to vector<16x128xf32>
    %20 = arith.addf %18, %19 : vector<16x128xf32>
    %21 = arith.truncf %20 : vector<16x128xf32> to vector<16x128xbf16>
    %c1_16 = arith.constant 1 : index
    %c0_17 = arith.constant 0 : index
    %c0_18 = arith.constant 0 : index
    %22 = vector.load %arg4[%c1_16, %c0_17, %c0_18] : memref<4x128x128xbf16, #tpu.memory_space<vmem>>, vector<1x128x128xbf16>
    %23 = vector.shape_cast %22 : vector<1x128x128xbf16> to vector<128x128xbf16>
    %cst_19 = arith.constant dense<0.000000e+00> : vector<16x128xf32>
    %24 = tpu.matmul %21, %23, %cst_19 {dimension_numbers = #tpu.dot_dimension_numbers<[1], [0], [0], [1], [0, 0, 1, 1], [], []>} : vector<16x128xbf16>, vector<128x128xbf16>, vector<16x128xf32> -> vector<16x128xf32>
    %25 = vector.broadcast %2 : vector<1x128xf32> to vector<16x128xf32>
    %26 = arith.addf %24, %25 : vector<16x128xf32>
    %cst_20 = arith.constant 0.000000e+00 : f32
    %27 = vector.broadcast %cst_20 : f32 to vector<16x128xf32>
    %28 = arith.maximumf %26, %27 : vector<16x128xf32>
    %29 = arith.truncf %28 : vector<16x128xf32> to vector<16x128xbf16>
    %c2_21 = arith.constant 2 : index
    %c0_22 = arith.constant 0 : index
    %c0_23 = arith.constant 0 : index
    %30 = vector.load %arg4[%c2_21, %c0_22, %c0_23] : memref<4x128x128xbf16, #tpu.memory_space<vmem>>, vector<1x128x128xbf16>
    %31 = vector.shape_cast %30 : vector<1x128x128xbf16> to vector<128x128xbf16>
    %cst_24 = arith.constant dense<0.000000e+00> : vector<16x128xf32>
    %32 = tpu.matmul %29, %31, %cst_24 {dimension_numbers = #tpu.dot_dimension_numbers<[1], [0], [0], [1], [0, 0, 1, 1], [], []>} : vector<16x128xbf16>, vector<128x128xbf16>, vector<16x128xf32> -> vector<16x128xf32>
    %33 = arith.truncf %12 : vector<16x128xf32> to vector<16x128xbf16>
    %c3_25 = arith.constant 3 : index
    %c0_26 = arith.constant 0 : index
    %c0_27 = arith.constant 0 : index
    %34 = vector.load %arg4[%c3_25, %c0_26, %c0_27] : memref<4x128x128xbf16, #tpu.memory_space<vmem>>, vector<1x128x128xbf16>
    %35 = vector.shape_cast %34 : vector<1x128x128xbf16> to vector<128x128xbf16>
    %cst_28 = arith.constant dense<0.000000e+00> : vector<16x128xf32>
    %36 = tpu.matmul %33, %35, %cst_28 {dimension_numbers = #tpu.dot_dimension_numbers<[1], [0], [0], [1], [0, 0, 1, 1], [], []>} : vector<16x128xbf16>, vector<128x128xbf16>, vector<16x128xf32> -> vector<16x128xf32>
    %37 = arith.addf %32, %36 : vector<16x128xf32>
    %38 = vector.broadcast %3 : vector<1x128xf32> to vector<16x128xf32>
    %39 = arith.addf %37, %38 : vector<16x128xf32>
    %cst_29 = arith.constant 0.000000e+00 : f32
    %40 = vector.broadcast %cst_29 : f32 to vector<16x128xf32>
    %41 = arith.maximumf %39, %40 : vector<16x128xf32>
    %c0_30 = arith.constant 0 : index
    %c0_31 = arith.constant 0 : index
    %42 = vector.load %arg6[%c0_30, %c0_31] : memref<16x128xf32, #tpu.memory_space<vmem>>, vector<16x128xf32>
    tpu.vector_store %arg6[%c0_30, %c0_31], %41 {strides = array<i32>} : memref<16x128xf32, #tpu.memory_space<vmem>>, vector<16x128xf32>,
    return
  }
  func.func @transform_0(%arg0: i32) -> (i32, i32) {
    %c0_i32 = arith.constant 0 : i32
    %c0_i32_0 = arith.constant 0 : i32
    return %arg0, %c0_i32 : i32, i32
  }
  func.func @transform_1(%arg0: i32) -> (i32, i32) {
    %c0_i32 = arith.constant 0 : i32
    %c0_i32_0 = arith.constant 0 : i32
    return %arg0, %c0_i32 : i32, i32
  }
  func.func @transform_2(%arg0: i32) -> (i32, i32) {
    %c0_i32 = arith.constant 0 : i32
    %c0_i32_0 = arith.constant 0 : i32
    %c0_i32_1 = arith.constant 0 : i32
    return %c0_i32, %c0_i32_0 : i32, i32
  }
  func.func @transform_3(%arg0: i32) -> (i32, i32, i32) {
    %c0_i32 = arith.constant 0 : i32
    %c0_i32_0 = arith.constant 0 : i32
    %c0_i32_1 = arith.constant 0 : i32
    %c0_i32_2 = arith.constant 0 : i32
    return %c0_i32, %c0_i32_0, %c0_i32_1 : i32, i32, i32
  }
  func.func @transform_4(%arg0: i32) -> (i32, i32) {
    %c0_i32 = arith.constant 0 : i32
    %c0_i32_0 = arith.constant 0 : i32
    %c0_i32_1 = arith.constant 0 : i32
    return %c0_i32, %c0_i32_0 : i32, i32
  }
  func.func @transform_5(%arg0: i32) -> (i32, i32) {
    %c0_i32 = arith.constant 0 : i32
    %c0_i32_0 = arith.constant 0 : i32
    return %arg0, %c0_i32 : i32, i32
  }
}

</mosaic_0001>

<bundles_post_ra>
// kernel: tpu_custom_call.1
= control target key start
LH: loop header
LB: loop body
LE: loop exit
PB: predicated region body
PF: predicated region fallthrough
CT: control target
= control target key end

     0   :  { %s2130_s0 = inlined_call_operand.vmem [shape: bf16[16,1024], index: 0, kind: input, shape index: {}]   ;;  %s2131_s1 = inlined_call_operand.vmem [shape: f32[16,128], index: 1, kind: input, shape index: {}]   ;;  %s2132_s2 = inlined_call_operand.vmem [shape: bf16[1024,32], index: 2, kind: input, shape index: {}]   ;;  %s2133_s3 = inlined_call_operand.vmem [shape: bf16[4,128,128], index: 3, kind: input, shape index: {}]   ;;  %s2134_s4 = inlined_call_operand.vmem [shape: f32[4,128], index: 4, kind: input, shape index: {}]   ;;  %s2135_s5 = inlined_call_operand.hbm [shape: f32[16,128], index: 5, kind: output, shape index: {}]  }
   0x1   :  { %v1593_v0 = vld [vmem:[%s2132_s2 + $0x40] sm:$0xff]   ;;  %v1597_v4 = vld [vmem:[%s2132_s2 + $0x48] sm:$0xff]   ;;  %v1601_v8 = vld [vmem:[%s2132_s2 + $0x50] sm:$0xff]  }
   0x2   :  { %v1594_v1 = vld [vmem:[%s2132_s2 + $0xc0] sm:$0xff]   ;;  %1384 = vmatprep.subr.bf16.mxu0 %v1593_v0  ;;  %v1598_v5 = vld [vmem:[%s2132_s2 + $0xc8] sm:$0xff]   ;;  %v1602_v9 = vld [vmem:[%s2132_s2 + $0xd0] sm:$0xff]  }
   0x3   :  { %v1595_v2 = vld [vmem:[%s2132_s2] sm:$0xff]   ;;  %1406 = vmatprep.subr.bf16.mxu1 %v1594_v1  ;;  %v1599_v6 = vld [vmem:[%s2132_s2 + $0x8] sm:$0xff]   ;;  %v1603_v10 = vld [vmem:[%s2132_s2 + $0x10] sm:$0xff]  }
   0x4   :  { %v1596_v3 = vld [vmem:[%s2132_s2 + $0x80] sm:$0xff]   ;;  %1385 = vmatpush3.bf16.msra.mxu0 %v1595_v2  ;;  %v1600_v7 = vld [vmem:[%s2132_s2 + $0x88] sm:$0xff]   ;;  %v1604_v11 = vld [vmem:[%s2132_s2 + $0x90] sm:$0xff]  }
   0x5   :  { %1407 = vmatpush3.bf16.msra.mxu1 %v1596_v3  ;;  %1386 = vmatprep.subr.bf16.mxu0 %v1597_v4  ;;  %v1605_v12 = vld [vmem:[%s2132_s2 + $0x58] sm:$0xff]   ;;  %v1609_v16 = vld [vmem:[%s2132_s2 + $0x60] sm:$0xff]   ;;  %v1613_v20 = vld [vmem:[%s2132_s2 + $0x68] sm:$0xff]  }
   0x6   :  { %1408 = vmatprep.subr.bf16.mxu1 %v1598_v5  ;;  %v1606_v13 = vld [vmem:[%s2132_s2 + $0xd8] sm:$0xff]   ;;  %v1610_v17 = vld [vmem:[%s2132_s2 + $0xe0] sm:$0xff]   ;;  %v1614_v21 = vld [vmem:[%s2132_s2 + $0xe8] sm:$0xff]  }
   0x7   :  { %v1607_v14 = vld [vmem:[%s2132_s2 + $0x18] sm:$0xff]   ;;  %v1611_v18 = vld [vmem:[%s2132_s2 + $0x20] sm:$0xff]   ;;  %v1615_v22 = vld [vmem:[%s2132_s2 + $0x28] sm:$0xff]  }
   0x8   :  { %1387 = vmatpush3.bf16.msra.mxu0 %v1599_v6  ;;  %v1608_v15 = vld [vmem:[%s2132_s2 + $0x98] sm:$0xff]   ;;  %v1612_v19 = vld [vmem:[%s2132_s2 + $0xa0] sm:$0xff]   ;;  %v1616_v23 = vld [vmem:[%s2132_s2 + $0xa8] sm:$0xff]  }
   0x9   :  { %1409 = vmatpush3.bf16.msra.mxu1 %v1600_v7  ;;  %1388 = vmatprep.subr.bf16.mxu0 %v1601_v8  ;;  %v1617_v24 = vld [vmem:[%s2132_s2 + $0x70] sm:$0xff]   ;;  %v1621_v28 = vld [vmem:[%s2132_s2 + $0x78] sm:$0xff]   ;;  %v26_v32 = vld [vmem:[%s2130_s0] sm:$0xff] }
   0xa   :  { %1410 = vmatprep.subr.bf16.mxu1 %v1602_v9  ;;  %v1618_v25 = vld [vmem:[%s2132_s2 + $0xf0] sm:$0xff]   ;;  %v1622_v29 = vld [vmem:[%s2132_s2 + $0xf8] sm:$0xff]   ;;  %v30_v33 = vld [vmem:[%s2130_s0 + $0x20] sm:$0xff] }
   0xb   :  { %v1619_v26 = vld [vmem:[%s2132_s2 + $0x30] sm:$0xff]   ;;  %v1623_v30 = vld [vmem:[%s2132_s2 + $0x38] sm:$0xff]   ;;  %v27_v34 = vld [vmem:[%s2130_s0 + $0x8] sm:$0xff]  ;;  %v1228_v35 = vcombine.low %v26_v32, %v30_v33  ;;  %v1229_v36 = vcombine.high %v26_v32, %v30_v33 }
   0xc   :  { %1389 = vmatpush3.bf16.msra.mxu0 %v1603_v10  ;;  %v1620_v27 = vld [vmem:[%s2132_s2 + $0xb0] sm:$0xff]   ;;  %v1624_v31 = vld [vmem:[%s2132_s2 + $0xb8] sm:$0xff]   ;;  %v31_v37 = vld [vmem:[%s2130_s0 + $0x28] sm:$0xff] }
   0xd   :  { %1411 = vmatpush3.bf16.msra.mxu1 %v1604_v11  ;;  %1390 = vmatprep.subr.bf16.mxu0 %v1605_v12  ;;  %v1230_v38 = vcombine.low %v27_v34, %v31_v37  ;;  %v1231_v39 = vcombine.high %v27_v34, %v31_v37  ;;  %v1625_v40 = vld [vmem:[%s2132_s2 + $0x140] sm:$0xff]   ;;  %v1629_v44 = vld [vmem:[%s2132_s2 + $0x148] sm:$0xff]   ;;  %v1633_v48 = vld [vmem:[%s2132_s2 + $0x150] sm:$0xff]  }
   0xe   :  { %1412 = vmatprep.subr.bf16.mxu1 %v1606_v13  ;;  %618 = vmatprep.mubr.bf16.mxu0 %v1229_v36  ;;  %v1626_v41 = vld [vmem:[%s2132_s2 + $0x1c0] sm:$0xff]   ;;  %v1630_v45 = vld [vmem:[%s2132_s2 + $0x1c8] sm:$0xff]   ;;  %v1634_v49 = vld [vmem:[%s2132_s2 + $0x1d0] sm:$0xff]  }
   0xf   :  { %659 = vmatprep.mubr.bf16.mxu1 %v1231_v39  ;;  %v1627_v42 = vld [vmem:[%s2132_s2 + $0x100] sm:$0xff]   ;;  %v1631_v46 = vld [vmem:[%s2132_s2 + $0x108] sm:$0xff]   ;;  %v1635_v50 = vld [vmem:[%s2132_s2 + $0x110] sm:$0xff]  }
  0x10   :  { %1391 = vmatpush3.bf16.msra.mxu0 %v1607_v14  ;;  %v1628_v43 = vld [vmem:[%s2132_s2 + $0x180] sm:$0xff]   ;;  %v1632_v47 = vld [vmem:[%s2132_s2 + $0x188] sm:$0xff]   ;;  %v1636_v51 = vld [vmem:[%s2132_s2 + $0x190] sm:$0xff]  }
  0x11   :  { %1413 = vmatpush3.bf16.msra.mxu1 %v1608_v15  ;;  %1392 = vmatprep.subr.bf16.mxu0 %v1609_v16  ;;  %v1637_v52 = vld [vmem:[%s2132_s2 + $0x158] sm:$0xff]   ;;  %v1641_v56 = vld [vmem:[%s2132_s2 + $0x160] sm:$0xff]   ;;  %v1645_v60 = vld [vmem:[%s2132_s2 + $0x168] sm:$0xff]  }
  0x12   :  { %1414 = vmatprep.subr.bf16.mxu1 %v1610_v17  ;;  %v1638_v53 = vld [vmem:[%s2132_s2 + $0x1d8] sm:$0xff]   ;;  %v1642_v57 = vld [vmem:[%s2132_s2 + $0x1e0] sm:$0xff]   ;;  %v1646_v61 = vld [vmem:[%s2132_s2 + $0x1e8] sm:$0xff]  }
  0x13   :  { %v1639_v54 = vld [vmem:[%s2132_s2 + $0x118] sm:$0xff]   ;;  %v1643_v58 = vld [vmem:[%s2132_s2 + $0x120] sm:$0xff]   ;;  %v1647_v62 = vld [vmem:[%s2132_s2 + $0x128] sm:$0xff]  }
  0x14   :  { %1393 = vmatpush3.bf16.msra.mxu0 %v1611_v18  ;;  %v1640_v55 = vld [vmem:[%s2132_s2 + $0x198] sm:$0xff]   ;;  %v1644_v59 = vld [vmem:[%s2132_s2 + $0x1a0] sm:$0xff]   ;;  %v1648_v63 = vld [vmem:[%s2132_s2 + $0x1a8] sm:$0xff]  }
  0x15   :  { %1415 = vmatpush3.bf16.msra.mxu1 %v1612_v19  ;;  %1394 = vmatprep.subr.bf16.mxu0 %v1613_v20  ;;  %v1649_v0 = vld [vmem:[%s2132_s2 + $0x170] sm:$0xff]   ;;  %v1653_v4 = vld [vmem:[%s2132_s2 + $0x178] sm:$0xff]  }
  0x16   :  { %1416 = vmatprep.subr.bf16.mxu1 %v1614_v21  ;;  %v1650_v1 = vld [vmem:[%s2132_s2 + $0x1f0] sm:$0xff]   ;;  %v1654_v5 = vld [vmem:[%s2132_s2 + $0x1f8] sm:$0xff]  }
  0x17   :  { %v1651_v2 = vld [vmem:[%s2132_s2 + $0x130] sm:$0xff]   ;;  %v1655_v6 = vld [vmem:[%s2132_s2 + $0x138] sm:$0xff]  }
  0x18   :  { %1395 = vmatpush3.bf16.msra.mxu0 %v1615_v22  ;;  %v1652_v3 = vld [vmem:[%s2132_s2 + $0x1b0] sm:$0xff]   ;;  %v1656_v7 = vld [vmem:[%s2132_s2 + $0x1b8] sm:$0xff]  }
  0x19   :  { %1417 = vmatpush3.bf16.msra.mxu1 %v1616_v23  ;;  %1396 = vmatprep.subr.bf16.mxu0 %v1617_v24  ;;  %v28_v8 = vld [vmem:[%s2130_s0 + $0x10] sm:$0xff]  ;;  %v29_v12 = vld [vmem:[%s2130_s0 + $0x18] sm:$0xff] }
  0x1a   :  { %1418 = vmatprep.subr.bf16.mxu1 %v1618_v25  ;;  %v32_v9 = vld [vmem:[%s2130_s0 + $0x30] sm:$0xff]  ;;  %v33_v13 = vld [vmem:[%s2130_s0 + $0x38] sm:$0xff] }
  0x1b   :  { %v1232_v10 = vcombine.low %v28_v8, %v32_v9  ;;  %v1233_v11 = vcombine.high %v28_v8, %v32_v9  ;;  %v1234_v14 = vcombine.low %v29_v12, %v33_v13  ;;  %v1235_v15 = vcombine.high %v29_v12, %v33_v13 }
  0x1c   :  { %1397 = vmatpush3.bf16.msra.mxu0 %v1619_v26 }
  0x1d   :  { %1419 = vmatpush3.bf16.msra.mxu1 %v1620_v27  ;;  %1398 = vmatprep.subr.bf16.mxu0 %v1621_v28 }
  0x1e   :  { %1420 = vmatprep.subr.bf16.mxu1 %v1622_v29 }
  0x20   :  { %1399 = vmatpush3.bf16.msra.mxu0 %v1623_v30 }
  0x21   :  { %1421 = vmatpush3.bf16.msra.mxu1 %v1624_v31  ;;  %1428 = vmatprep.subr.bf16.mxu0 %v1625_v40 }
  0x22   :  { %1450 = vmatprep.subr.bf16.mxu1 %v1626_v41 }
  0x23   :  { %619 = vmatmul.mubr.bf16.vlgmr.msra.gmra.mrb[0].mxu0 %v1228_v35 }
  0x24   :  { %660 = vmatmul.mubr.bf16.vlgmr.msra.gmra.mrb[0].mxu1 %v1230_v38  ;;  %1429 = vmatpush3.bf16.msra.mxu0 %v1627_v42 }
  0x25   :  { %1451 = vmatpush3.bf16.msra.mxu1 %v1628_v43  ;;  %1430 = vmatprep.subr.bf16.mxu0 %v1629_v44 }
  0x26   :  { %1452 = vmatprep.subr.bf16.mxu1 %v1630_v45  ;;  %700 = vmatprep.mubr.bf16.mxu0 %v1233_v11 }
  0x27   :  { %741 = vmatprep.mubr.bf16.mxu1 %v1235_v15 }
  0x28   :  { %1431 = vmatpush3.bf16.msra.mxu0 %v1631_v46 }
  0x29   :  { %1453 = vmatpush3.bf16.msra.mxu1 %v1632_v47  ;;  %1432 = vmatprep.subr.bf16.mxu0 %v1633_v48 }
  0x2a   :  { %1454 = vmatprep.subr.bf16.mxu1 %v1634_v49 }
  0x2c   :  { %1433 = vmatpush3.bf16.msra.mxu0 %v1635_v50 }
  0x2d   :  { %1455 = vmatpush3.bf16.msra.mxu1 %v1636_v51  ;;  %1434 = vmatprep.subr.bf16.mxu0 %v1637_v52 }
  0x2e   :  { %1456 = vmatprep.subr.bf16.mxu1 %v1638_v53 }
  0x30   :  { %1435 = vmatpush3.bf16.msra.mxu0 %v1639_v54 }
  0x31   :  { %1457 = vmatpush3.bf16.msra.mxu1 %v1640_v55  ;;  %1436 = vmatprep.subr.bf16.mxu0 %v1641_v56 }
  0x32   :  { %1458 = vmatprep.subr.bf16.mxu1 %v1642_v57 }
  0x34   :  { %1437 = vmatpush3.bf16.msra.mxu0 %v1643_v58 }
  0x35   :  { %1459 = vmatpush3.bf16.msra.mxu1 %v1644_v59  ;;  %1438 = vmatprep.subr.bf16.mxu0 %v1645_v60 }
  0x36   :  { %1460 = vmatprep.subr.bf16.mxu1 %v1646_v61 }
  0x38   :  { %1439 = vmatpush3.bf16.msra.mxu0 %v1647_v62 }
  0x39   :  { %1461 = vmatpush3.bf16.msra.mxu1 %v1648_v63  ;;  %1440 = vmatprep.subr.bf16.mxu0 %v1649_v0 }
  0x3a   :  { %1462 = vmatprep.subr.bf16.mxu1 %v1650_v1 }
  0x3c   :  { %1441 = vmatpush3.bf16.msra.mxu0 %v1651_v2 }
  0x3d   :  { %1463 = vmatpush3.bf16.msra.mxu1 %v1652_v3  ;;  %1442 = vmatprep.subr.bf16.mxu0 %v1653_v4 }
  0x3e   :  { %1464 = vmatprep.subr.bf16.mxu1 %v1654_v5 }
  0x40   :  { %1443 = vmatpush3.bf16.msra.mxu0 %v1655_v6 }
  0x41   :  { %1465 = vmatpush3.bf16.msra.mxu1 %v1656_v7 }
  0x43   :  { %701 = vmatmul.mubr.bf16.vlgmr.msra.gmra.mrb[4].mxu0 %v1232_v10 }
  0x44   :  { %742 = vmatmul.mubr.bf16.vlgmr.msra.gmra.mrb[4].mxu1 %v1234_v14 }
  0x45   :  { %10 = vsyncpa [#allocation3], 0  ;;  %v1657_v16 = vld [vmem:[%s2133_s3] sm:$0xff]   ;;  %v1713_v17 = vmov 0.0   ;;  %v1658_v18 = vld [vmem:[%s2133_s3 + $0x8] sm:$0xff]   ;;  %vm1714_vm0 = vmmov 0  }
  0x46   :  { %1508 = vmatprep.subr.bf16.mxu0 %v1713_v17  ;;  %1528 = vmatprep.subr.bf16.mxu1 %v1713_v17  ;;  %v1659_v19 = vld [vmem:[%s2133_s3 + $0x10] sm:$0xff]   ;;  %v1660_v20 = vld [vmem:[%s2133_s3 + $0x18] sm:$0xff]   ;;  %v1661_v21 = vld [vmem:[%s2133_s3 + $0x20] sm:$0xff]   ;;  %vm750_vm1 = vcmask 261120  }
  0x47   :  { %1509 = vmatpush3.bf16.msra.mxu0 %v1657_v16  ;;  %v1662_v22 = vld [vmem:[%s2133_s3 + $0x28] sm:$0xff]   ;;  %v1663_v23 = vld [vmem:[%s2133_s3 + $0x30] sm:$0xff]   ;;  %v1664_v24 = vld [vmem:[%s2133_s3 + $0x38] sm:$0xff]   ;;  %1524 = vmatprep.mubr.msk.bf16.mxu0 %vm1714_vm0, %v1713_v17 }
  0x48   :  { %1510 = vmatprep.subr.bf16.mxu0 %v1713_v17  ;;  %1544 = vmatprep.mubr.msk.bf16.mxu1 %vm1714_vm0, %v1713_v17  ;;  %v1673_v25 = vld [vmem:[%s2133_s3 + $0x40] sm:$0xff]   ;;  %v1674_v26 = vld [vmem:[%s2133_s3 + $0x48] sm:$0xff]   ;;  %v1675_v27 = vld [vmem:[%s2133_s3 + $0x50] sm:$0xff]  }
  0x49   :  { %1529 = vmatpush3.bf16.msra.mxu1 %v1673_v25  ;;  %v1676_v28 = vld [vmem:[%s2133_s3 + $0x58] sm:$0xff]   ;;  %v1677_v29 = vld [vmem:[%s2133_s3 + $0x60] sm:$0xff]   ;;  %v1678_v30 = vld [vmem:[%s2133_s3 + $0x68] sm:$0xff]  }
  0x4a   :  { %1530 = vmatprep.subr.bf16.mxu1 %v1713_v17  ;;  %v1300_v58 = vld [vmem:[%s2134_s4] ss:$0 sm:$0xff]  ;;  %v760_v2 = vld [vmem:[%s2131_s1 + $0x8] sm:$0xff]  ;;  %v1667_v12 = vld [vmem:[%s2133_s3 + $0xd0] sm:$0xff]  }
  0x4b   :  { %1511 = vmatpush3.bf16.msra.mxu0 %v1658_v18  ;;  %v759_v0 = vld [vmem:[%s2131_s1] sm:$0xff]  ;;  %v1666_v11 = vld [vmem:[%s2133_s3 + $0xc8] sm:$0xff]   ;;  %v1668_v13 = vld [vmem:[%s2133_s3 + $0xd8] sm:$0xff]  }
  0x4c   :  { %1512 = vmatprep.subr.bf16.mxu0 %v1713_v17  ;;  %v1665_v8 = vld [vmem:[%s2133_s3 + $0xc0] sm:$0xff]   ;;  %v1670_v15 = vld [vmem:[%s2133_s3 + $0xe8] sm:$0xff]   ;;  %v1671_v16 = vld [vmem:[%s2133_s3 + $0xf0] sm:$0xff]  }
  0x4d   :  { %1531 = vmatpush3.bf16.msra.mxu1 %v1674_v26  ;;  %v1669_v14 = vld [vmem:[%s2133_s3 + $0xe0] sm:$0xff]   ;;  %v1672_v18 = vld [vmem:[%s2133_s3 + $0xf8] sm:$0xff]  }
  0x4e   :  { %1532 = vmatprep.subr.bf16.mxu1 %v1713_v17 }
  0x4f   :  { %1513 = vmatpush3.bf16.msra.mxu0 %v1659_v19  ;;  %v1679_v19 = vld [vmem:[%s2133_s3 + $0x70] sm:$0xff]  }
  0x50   :  { %1514 = vmatprep.subr.bf16.mxu0 %v1713_v17 }
  0x51   :  { %1533 = vmatpush3.bf16.msra.mxu1 %v1675_v27 }
  0x52   :  { %1534 = vmatprep.subr.bf16.mxu1 %v1713_v17 }
  0x53   :  { %1515 = vmatpush3.bf16.msra.mxu0 %v1660_v20  ;;  %v1680_v20 = vld [vmem:[%s2133_s3 + $0x78] sm:$0xff]  }
  0x54   :  { %1516 = vmatprep.subr.bf16.mxu0 %v1713_v17 }
  0x55   :  { %1535 = vmatpush3.bf16.msra.mxu1 %v1676_v28  ;;  %v1681_v28 = vld [vmem:[%s2133_s3 + $0x80] sm:$0xff]  }
  0x56   :  { %1536 = vmatprep.subr.bf16.mxu1 %v1713_v17 }
  0x57   :  { %1517 = vmatpush3.bf16.msra.mxu0 %v1661_v21  ;;  %v1301_v21 = vld [vmem:[%s2134_s4 + $0x1] ss:$0 sm:$0xff] }
  0x58   :  { %1518 = vmatprep.subr.bf16.mxu0 %v1713_v17 }
  0x59   :  { %1537 = vmatpush3.bf16.msra.mxu1 %v1677_v29 }
  0x5a   :  { %1538 = vmatprep.subr.bf16.mxu1 %v1713_v17 }
  0x5b   :  { %1519 = vmatpush3.bf16.msra.mxu0 %v1662_v22 }
  0x5c   :  { %1520 = vmatprep.subr.bf16.mxu0 %v1713_v17 }
  0x5d   :  { %1539 = vmatpush3.bf16.msra.mxu1 %v1678_v30  ;;  %v1682_v30 = vld [vmem:[%s2133_s3 + $0x88] sm:$0xff]  }
  0x5e   :  { %1540 = vmatprep.subr.bf16.mxu1 %v1713_v17 }
  0x5f   :  { %1521 = vmatpush3.bf16.msra.mxu0 %v1663_v23 }
  0x60   :  { %1522 = vmatprep.subr.bf16.mxu0 %v1713_v17 }
  0x61   :  { %1541 = vmatpush3.bf16.msra.mxu1 %v1679_v19 }
  0x62   :  { %1542 = vmatprep.subr.bf16.mxu1 %v1713_v17 }
  0x63   :  { %1523 = vmatpush3.bf16.msra.mxu0 %v1664_v24 }
  0x64   :  { %1548 = vmatprep.subr.bf16.mxu0 %v1713_v17 }
  0x65   :  { %1543 = vmatpush3.bf16.msra.mxu1 %v1680_v20 }
  0x66   :  { %1568 = vmatprep.subr.bf16.mxu1 %v1713_v17 }
  0xf6   :  { %v1400_v31 = vpop.f32.mrb[0].mxu0 }
  0xf7   :  { %v1422_v32 = vpop.f32.mrb[0].mxu1  ;;  %v1401_v33 = vpop.f32.mrb[1].mxu0 }
  0xf8   :  { %v1402_v34 = vadd.f32 %v1401_v33, %v1400_v31  ;;  %v1423_v35 = vpop.f32.mrb[1].mxu1  ;;  %v1403_v36 = vpop.f32.mrb[2].mxu0  ;;  %v1683_v31 = vld [vmem:[%s2133_s3 + $0x90] sm:$0xff]   ;;  %v1685_v33 = vld [vmem:[%s2133_s3 + $0xa0] sm:$0xff]  }
  0xf9   :  { %v1424_v37 = vadd.f32 %v1423_v35, %v1422_v32  ;;  %v1425_v38 = vpop.f32.mrb[2].mxu1  ;;  %v1404_v39 = vpop.f32.mrb[3].mxu0  ;;  %v1684_v32 = vld [vmem:[%s2133_s3 + $0x98] sm:$0xff]  }
  0xfa   :  { %v1405_v40 = vadd.f32 %v1404_v39, %v1403_v36  ;;  %v1426_v41 = vpop.f32.mrb[3].mxu1  ;;  %v1687_v39 = vld [vmem:[%s2133_s3 + $0xb0] sm:$0xff]  }
  0xfb   :  { %v662_v42 = vadd.f32 %v1424_v37, %v1402_v34  ;;  %v1427_v43 = vadd.f32 %v1426_v41, %v1425_v38  ;;  %v1686_v34 = vld [vmem:[%s2133_s3 + $0xa8] sm:$0xff]   ;;  %v1326_v41 = vld [vmem:[%s2134_s4 + $0x2] ss:$0 sm:$0xff] }
  0xfd   :  { %v665_v44 = vadd.f32 %v1427_v43, %v1405_v40  ;;  %v1688_v40 = vld [vmem:[%s2133_s3 + $0xb8] sm:$0xff]   ;;  %s1715_s3 = smov [#allocation2]  }
  0xfe   :  { %s1217_s30 = sshll.u32 %s1715_s3, 4  ;;  %s1218_s30 = int_to_ptr.vmem [resolvable:$true] %s1217_s30 }
  0xff   :  { %s1689_s6 = scalar_lea.vmem %s1218_s30, 256  ;;  %p1694_p1 = scmp.lt.s32.totalorder %s1218_s30, %s1218_s30 }
 0x100   :  { %p1690_p0 = scmp.ne.s32.totalorder %s1218_s30, %s1689_s6  ;;  %p1695_p2 = scmp.lt.s32.totalorder %s1689_s6, %s1689_s6 }
 0x102   :  { %p1696_p3 = por %p1695_p2, %p1694_p1 }
 0x104   :  { %p1697_p4 = pnand %p1696_p3, %p1690_p0 }
 0x116   :  { %v1444_v45 = vpop.f32.mrb[4].mxu0 }
 0x117   :  { %v1466_v46 = vpop.f32.mrb[4].mxu1  ;;  %v1445_v47 = vpop.f32.mrb[5].mxu0 }
 0x118   :  { %v1446_v48 = vadd.f32 %v1445_v47, %v1444_v45  ;;  %v1467_v49 = vpop.f32.mrb[5].mxu1  ;;  %v1447_v50 = vpop.f32.mrb[6].mxu0 }
 0x119   :  { %v1468_v51 = vadd.f32 %v1467_v49, %v1466_v46  ;;  %v1469_v52 = vpop.f32.mrb[6].mxu1  ;;  %v1448_v53 = vpop.f32.mrb[7].mxu0 }
 0x11a   :  { %v703_v54 = vadd.f32 %v1446_v48, %v662_v42  ;;  %v1449_v55 = vadd.f32 %v1448_v53, %v1447_v50  ;;  %v1470_v56 = vpop.f32.mrb[7].mxu1 }
 0x11b   :  { %v1471_v57 = vadd.f32 %v1470_v56, %v1469_v52 }
 0x11c   :  { %v744_v59 = vadd.f32 %v1468_v51, %v703_v54  ;;  %v706_v60 = vadd.f32 %v1449_v55, %v665_v44 }
 0x11e   :  { %v751_v61 = vsel %vm750_vm1, %v744_v59, 0.0  ;;  %v747_v62 = vadd.f32 %v1471_v57, %v706_v60 }
 0x11f   :  { %v757_v63 = vadd.f32 %v1300_v58, %v751_v61 }
 0x120   :  { %v752_v1 = vsel %vm750_vm1, %v747_v62, 0.0 }
 0x121   :  { %v758_v3 = vadd.f32 %v1300_v58, %v752_v1  ;;  %v761_v4 = vadd.f32 %v759_v0, %v757_v63  ;;  %v763_v5 = vmax.f32 %v757_v63, 0.0 }
 0x123   :  { %v762_v6 = vadd.f32 %v760_v2, %v758_v3  ;;  %v764_v7 = vmax.f32 %v758_v3, 0.0 }
 0x125   :  { %v765_v9 = vpack.c.bf16 %v764_v7, %v763_v5  ;;  %v1006_v10 = vpack.c.bf16 %v762_v6, %v761_v4 }
 0x127   :  { %1525 = vmatmul.mubr.bf16.vlgmr.msra.gmra.mrb[8].mxu0 %v765_v9 }
 0x128   :  { %1549 = vmatpush3.bf16.msra.mxu0 %v1665_v8  ;;  %1564 = vmatprep.mubr.msk.bf16.mxu0 %vm1714_vm0, %v1713_v17 }
 0x129   :  { %1550 = vmatprep.subr.bf16.mxu0 %v1713_v17 }
 0x12c   :  { %1551 = vmatpush3.bf16.msra.mxu0 %v1666_v11 }
 0x12d   :  { %1552 = vmatprep.subr.bf16.mxu0 %v1713_v17 }
 0x130   :  { %1553 = vmatpush3.bf16.msra.mxu0 %v1667_v12 }
 0x131   :  { %1554 = vmatprep.subr.bf16.mxu0 %v1713_v17 }
 0x134   :  { %1555 = vmatpush3.bf16.msra.mxu0 %v1668_v13 }
 0x135   :  { %1556 = vmatprep.subr.bf16.mxu0 %v1713_v17 }
 0x138   :  { %1557 = vmatpush3.bf16.msra.mxu0 %v1669_v14 }
 0x139   :  { %1558 = vmatprep.subr.bf16.mxu0 %v1713_v17 }
 0x13c   :  { %1559 = vmatpush3.bf16.msra.mxu0 %v1670_v15 }
 0x13d   :  { %1560 = vmatprep.subr.bf16.mxu0 %v1713_v17 }
 0x140   :  { %1561 = vmatpush3.bf16.msra.mxu0 %v1671_v16 }
 0x141   :  { %1562 = vmatprep.subr.bf16.mxu0 %v1713_v17 }
 0x144   :  { %1563 = vmatpush3.bf16.msra.mxu0 %v1672_v18 }
 0x147   :  { %1565 = vmatmul.mubr.bf16.vlgmr.msra.gmra.mrb[12].mxu0 %v1006_v10 }
 0x1fa   :  { %v868_v22 = vpop.f32.mrb[8].mxu0 }
 0x1fb   :  { %v1526_v23 = vpop.f32.mrb[9].mxu0  ;;  %v869_v25 = vadd.f32 %v1301_v21, %v868_v22 }
 0x1fc   :  { %v871_v24 = vpop.f32.mrb[10].mxu0 }
 0x1fd   :  { %v872_v26 = vadd.f32 %v1301_v21, %v871_v24  ;;  %v1527_v27 = vpop.f32.mrb[11].mxu0 }
 0x1ff   :  { %v875_v29 = vpack.c.bf16 %v872_v26, %v869_v25 }
 0x201   :  { %1545 = vmatmul.mubr.bf16.vlgmr.msra.gmra.mrb[8].mxu1 %v875_v29 }
 0x202   :  { %1569 = vmatpush3.bf16.msra.mxu1 %v1681_v28  ;;  %1584 = vmatprep.mubr.msk.bf16.mxu1 %vm1714_vm0, %v1713_v17 }
 0x203   :  { %1570 = vmatprep.subr.bf16.mxu1 %v1713_v17 }
 0x206   :  { %1571 = vmatpush3.bf16.msra.mxu1 %v1682_v30 }
 0x207   :  { %1572 = vmatprep.subr.bf16.mxu1 %v1713_v17 }
 0x20a   :  { %1573 = vmatpush3.bf16.msra.mxu1 %v1683_v31 }
 0x20b   :  { %1574 = vmatprep.subr.bf16.mxu1 %v1713_v17 }
 0x20e   :  { %1575 = vmatpush3.bf16.msra.mxu1 %v1684_v32 }
 0x20f   :  { %1576 = vmatprep.subr.bf16.mxu1 %v1713_v17 }
 0x212   :  { %1577 = vmatpush3.bf16.msra.mxu1 %v1685_v33 }
 0x213   :  { %1578 = vmatprep.subr.bf16.mxu1 %v1713_v17 }
 0x216   :  { %1579 = vmatpush3.bf16.msra.mxu1 %v1686_v34 }
 0x217   :  { %1580 = vmatprep.subr.bf16.mxu1 %v1713_v17 }
 0x21a   :  { %v1106_v35 = vpop.f32.mrb[12].mxu0  ;;  %1581 = vmatpush3.bf16.msra.mxu1 %v1687_v39 }
 0x21b   :  { %v1566_v36 = vpop.f32.mrb[13].mxu0  ;;  %1582 = vmatprep.subr.bf16.mxu1 %v1713_v17  ;;  %v1383_v17 = vld [vmem:[%s2134_s4 + $0x3] ss:$0 sm:$0xff] }
 0x21c   :  { %v1109_v37 = vpop.f32.mrb[14].mxu0 }
 0x21d   :  { %v1567_v38 = vpop.f32.mrb[15].mxu0 }
 0x21e   :  { %1583 = vmatpush3.bf16.msra.mxu1 %v1688_v40 }
 0x2d4   :  { %v979_v42 = vpop.f32.mrb[8].mxu1 }
 0x2d5   :  { %v980_v43 = vadd.f32 %v1326_v41, %v979_v42  ;;  %v1546_v44 = vpop.f32.mrb[9].mxu1 }
 0x2d6   :  { %v982_v45 = vpop.f32.mrb[10].mxu1 }
 0x2d7   :  { %v983_v46 = vadd.f32 %v1326_v41, %v982_v45  ;;  %v1547_v47 = vpop.f32.mrb[11].mxu1  ;;  %v986_v48 = vmax.f32 %v980_v43, 0.0 }
 0x2d9   :  { %v987_v49 = vmax.f32 %v983_v46, 0.0 }
 0x2db   :  { %v988_v50 = vpack.c.bf16 %v987_v49, %v986_v48 }
 0x2dd   :  { %1585 = vmatmul.mubr.bf16.vlgmr.msra.gmra.mrb[12].mxu1 %v988_v50 }
 0x3b0   :  { %v1195_v51 = vpop.f32.mrb[12].mxu1 }
 0x3b1   :  { %v1196_v52 = vadd.f32 %v1195_v51, %v1106_v35  ;;  %v1586_v53 = vpop.f32.mrb[13].mxu1 }
 0x3b2   :  { %v1198_v54 = vpop.f32.mrb[14].mxu1 }
 0x3b3   :  { %v1206_v55 = vadd.f32 %v1383_v17, %v1196_v52  ;;  %v1199_v56 = vadd.f32 %v1198_v54, %v1109_v37  ;;  %v1587_v57 = vpop.f32.mrb[15].mxu1 }
 0x3b5   :  { %v1208_v58 = vmax.f32 %v1206_v55, 0.0  ;;  %v1207_v59 = vadd.f32 %v1383_v17, %v1199_v56 }
 0x3b7   :  { %1210 = vst [vmem:[#allocation2] sm:$0xff] %v1208_v58  ;;  %v1209_v60 = vmax.f32 %v1207_v59, 0.0 }
 0x3b9   :  { %1211 = vst [vmem:[#allocation2 + $0x8] sm:$0xff] %v1209_v60 }
 0x3ba   :  { %1700 = shalt.err (!%p1697_p4)
}
 0x3bb   :  { %s1701_s8 = scalar_lea.hbm %s2135_s5, 256 }
 0x3bc   :  { %p1702_p5 = scmp.ne.s32.totalorder %s2135_s5, %s1701_s8  ;;  %p1705_p6 = scmp.lt.u32.totalorder %s1701_s8, %s2135_s5 }
 0x3be   :  { %p1707_p7 = pnand %p1705_p6, %p1702_p5 }
 0x3c0   :  { %1710 = shalt.err (!%p1707_p7)
}
 0x3c1   :  { %s1716_s12 = smov 128   ;;  %s1717_s13 = smov 8  }
 0x3c2   :  { %1223 = dma.vmem_to_hbm [thread:$0]  %s1218_s30, 256, %s2135_s5, [#allocation3], %s1716_s12, %s1716_s12, %s1717_s13  }
 0x3c3   :  { %1711 = dma.done.wait [#allocation3], 256  }
 0x3c4   :  { %1712 = vsyncadd [#allocation3], 4294967040 }
 0x3c5   :  { %1227 = vsyncpa [#allocation3], 1 }

</bundles_post_ra>
